<compile_context>
chip_gen: v7x
topology: tpu7x:2x2x1
jax: 0.10.0
libtpu: 0.0.40
codegen_flags: <defaults>
</compile_context>

<pallas_src>
import math

import jax
import jax.numpy as jnp
from jax.experimental import pallas as pl
from jax.experimental.pallas import tpu as pltpu


def _ares_kernel(d_ref, o_ref):
    # d_ref: (1, tn) slice of the lane-dense pattern row.
    # o_ref: (tm, tn) output tile.
    # Sublane-broadcast of the single pattern row over the tile; no MXU, no
    # dtype round-trips, no (tm, tn) HBM temporary.
    o_ref[...] = jnp.broadcast_to(d_ref[...], o_ref.shape)


def _device_kind() -> str:
    try:
        return jax.devices()[0].device_kind.lower()
    except Exception:  # be robust in odd environments
        return ""


def _plan_layout(N, D, itemsize, max_pattern_bytes=16 << 20):
    """View the logical (N, D) broadcast output as a lane-dense (rows, width) slab.

    Returns (rows, width, reps) with rows * width == N * D, width == reps * D,
    and every slab row equal to d tiled `reps` times.  width is a multiple of
    128 whenever an exact row-major relayout exists -> unmasked vst stores.
    """
    if D % 128 == 0:
        return N, D, 1                          # already lane dense
    lcm = D * 128 // math.gcd(D, 128)           # smallest lane-dense super-row
    reps = lcm // D
    if (N * D) % lcm == 0 and lcm * itemsize <= max_pattern_bytes:
        return (N * D) // lcm, lcm, reps
    # Off the fast path: sub-128 / ragged lane dimension -> masked vst.msk
    # partial stores.  Correct, just slower.
    return N, D, 1


def _pick_col_tile(width, itemsize, max_tile_bytes):
    """Lane-dimension tile (multiple of 128) so that >= 8 rows fit the budget."""
    if 8 * width * itemsize <= max_tile_bytes:
        return width                            # no column tiling needed
    target = max(128, (max_tile_bytes // (8 * itemsize)) // 128 * 128)
    target = min(target, max(128, width // 128 * 128))
    if width % 128 == 0:
        # Prefer a divisor of width so no column block is ragged/masked.
        for tn in range(target, 127, -128):
            if width % tn == 0:
                return tn
    return target                               # ragged last block; Pallas masks it


def ares_forward(d, N, *, max_tile_bytes=None):
    """Computes ones(N, K) @ d with d of shape (K, D), K == 1 (row broadcast)."""
    K, D = d.shape
    assert K == 1, "Assumption of the method!"
    assert N >= 1 and D >= 1

    itemsize = jnp.dtype(d.dtype).itemsize
    kind = _device_kind()

    # Generation-aware tile budget (per output buffer; Pallas double-buffers).
    if max_tile_bytes is None:
        if "v5" in kind:          # lower HBM BW + 16 MiB scoped-VMEM default
            max_tile_bytes = 4 << 20
        elif "v7" in kind:        # ~3.2 TB/s HBM: amortize per-step overhead
            max_tile_bytes = 16 << 20
        else:                     # v6e and unknown generations
            max_tile_bytes = 8 << 20

    # ---- Lane-dense relayout of the logical (N, D) output -------------------
    rows, width, reps = _plan_layout(N, D, itemsize)
    d_row = jnp.tile(d, (1, reps)) if reps > 1 else d       # (1, width), tiny

    # ---- Tiling --------------------------------------------------------------
    tn = _pick_col_tile(width, itemsize, max_tile_bytes)
    tm = (max_tile_bytes // max(tn * itemsize, 1)) // 8 * 8
    tm = max(8, tm)
    if tm >= rows:
        tm = rows                 # full-extent row block: (8,128) rule exempt
    grid = (pl.cdiv(rows, tm), pl.cdiv(width, tn))

    # ---- Compiler params -----------------------------------------------------
    tile_bytes = tm * tn * itemsize
    vmem_limit_bytes = int(max(32 << 20, min(2 * tile_bytes + (8 << 20), 40 << 20)))
    if "v7" in kind and hasattr(pltpu, "CORE_PARALLEL"):
        # Split the independent row axis across the two v7x TensorCores so both
        # issue output DMAs.
        dim_sem = (pltpu.CORE_PARALLEL, pltpu.PARALLEL)
    else:
        dim_sem = ("parallel", "parallel")

    out_wide = pl.pallas_call(
        _ares_kernel,
        out_shape=jax.ShapeDtypeStruct((rows, width), d.dtype),
        grid=grid,
        in_specs=[
            # Pattern row: the (0, j) lane slice of the (1, width) pattern.
            pl.BlockSpec((1, tn), lambda i, j: (0, j)),
        ],
        out_specs=pl.BlockSpec((tm, tn), lambda i, j: (i, j)),
        compiler_params=pltpu.CompilerParams(
            dimension_semantics=dim_sem,
            vmem_limit_bytes=vmem_limit_bytes,
        ),
        # Pure-store op: tell XLA how big it is so surrounding HLO schedules
        # around the custom call sensibly.
        cost_estimate=pl.CostEstimate(
            flops=0,
            transcendentals=0,
            bytes_accessed=int(N * D * itemsize + width * itemsize),
        ),
    )(d_row)

    # Exact row-major relayout back to the logical output shape.
    return out_wide.reshape(N, D)


if __name__ == "__main__":
    # Small shapes consistent with the module: N samples, D features, K = 1.
    N, D, K = 8, 32, 1

    # The module zeros d in __init__; use deterministic random values so the
    # kernel computes something nontrivial.
    key = jax.random.PRNGKey(0)
    d = jax.random.normal(key, (K, D), dtype=jnp.float32)

    out = ares_forward(d, N)
    out = jax.block_until_ready(out)

    # Reference: ones(N, 1) @ d == d broadcast over N rows.
    ref = jnp.ones((N, K), jnp.float32) @ d
    assert out.shape == (N, D)
    assert jnp.allclose(out, ref, atol=1e-6), "mismatch vs reference"

    # TODO(synk): get_matrices()/loss() are trivial constant helpers with no
    # tensor compute; not implemented as kernels.

    print("KERNEL_OK")
</pallas_src>

<mosaic_0001>
module attributes {stable_mosaic.version = 11 : i64} {
  func.func @_ares_kernel(%arg0: i32, %arg1: i32, %arg2: memref<1x128xf32, #tpu.memory_space<vmem>>, %arg3: memref<2x128xf32, #tpu.memory_space<vmem>>) attributes {dimension_semantics = [#tpu.dimension_semantics<parallel>, #tpu.dimension_semantics<parallel>], iteration_bounds = array<i64: 1, 1>, scalar_prefetch = 0 : i64, scratch_operands = 0 : i64, tpu.core_type = #tpu.core_type<tc>, window_params = [{transform_indices = @transform_0, window_bounds = array<i64: 1, 128>}, {transform_indices = @transform_1, window_bounds = array<i64: 2, 128>}]} {
    %c0 = arith.constant 0 : index
    %c0_0 = arith.constant 0 : index
    %0 = vector.load %arg2[%c0, %c0_0] : memref<1x128xf32, #tpu.memory_space<vmem>>, vector<1x128xf32>
    %1 = vector.shape_cast %0 : vector<1x128xf32> to vector<1x128xf32>
    %2 = vector.broadcast %1 : vector<1x128xf32> to vector<2x128xf32>
    %c0_1 = arith.constant 0 : index
    %c0_2 = arith.constant 0 : index
    %3 = vector.load %arg3[%c0_1, %c0_2] : memref<2x128xf32, #tpu.memory_space<vmem>>, vector<2x128xf32>
    tpu.vector_store %arg3[%c0_1, %c0_2], %2 {strides = array<i32>} : memref<2x128xf32, #tpu.memory_space<vmem>>, vector<2x128xf32>,
    return
  }
  func.func @transform_0(%arg0: i32, %arg1: i32) -> (i32, i32) {
    %c0_i32 = arith.constant 0 : i32
    %c0_i32_0 = arith.constant 0 : i32
    return %c0_i32, %arg1 : i32, i32
  }
  func.func @transform_1(%arg0: i32, %arg1: i32) -> (i32, i32) {
    %c0_i32 = arith.constant 0 : i32
    return %arg0, %arg1 : i32, i32
  }
}

</mosaic_0001>

<bundles_post_ra>
// kernel: tpu_custom_call.1
= control target key start
LH: loop header
LB: loop body
LE: loop exit
PB: predicated region body
PF: predicated region fallthrough
CT: control target
= control target key end

     0   :  { %6 = vsyncpa [#allocation3], 0  ;;  %s131_s0 = inlined_call_operand.hbm [shape: f32[1,128], index: 0, kind: input, shape index: {}]   ;;  %s132_s1 = inlined_call_operand.hbm [shape: f32[2,128], index: 1, kind: output, shape index: {}]  }
   0x1   :  { %7 = vsyncpa [#allocation4], 0  ;;  %s95_s6 = smov [#allocation2]   ;;  %s47_s10 = scalar_lea.hbm %s131_s0, 16 }
   0x2   :  { %s14_s7 = sshll.u32 %s95_s6, 4  ;;  %p48_p0 = scmp.ne.s32.totalorder %s131_s0, %s47_s10  ;;  %s15_s7 = int_to_ptr.vmem [resolvable:$true] %s14_s7 }
   0x3   :  { %p51_p1 = scmp.lt.u32.totalorder %s47_s10, %s131_s0 }
   0x5   :  { %p53_p2 = pnand %p51_p1, %p48_p0 }
   0x7   :  { %56 = shalt.err (!%p53_p2)
}
   0x8   :  { %s57_s15 = scalar_lea.vmem %s15_s7, 16  ;;  %s61_s16 = scalar_lea.vmem %s15_s7, 32 }
   0x9   :  { %p58_p3 = scmp.ne.s32.totalorder %s15_s7, %s57_s15  ;;  %p62_p4 = scmp.lt.s32.totalorder %s15_s7, %s15_s7 }
   0xa   :  { %p63_p5 = scmp.lt.s32.totalorder %s61_s16, %s57_s15 }
   0xc   :  { %p64_p6 = por %p63_p5, %p62_p4 }
   0xe   :  { %p65_p7 = pnand %p64_p6, %p58_p3 }
  0x10   :  { %68 = shalt.err (!%p65_p7)
}
  0x11   :  { %17 = dma.hbm_to_vmem [thread:$0]  %s131_s0, 16, %s15_s7, [#allocation3]  }
  0x12   :  { %91 = dma.done.wait [#allocation3], 16  }
  0x13   :  { %92 = vsyncadd [#allocation3], 4294967280  ;;  %s96_s19 = smov [#allocation5]   ;;  %v44_v0 = vld [vmem:[#allocation2] ss:$0 sm:$0xff] }
  0x14   :  { %s35_s20 = sshll.u32 %s96_s19, 4  ;;  %28 = vst [vmem:[#allocation5] sm:$0x3] %v44_v0  ;;  %s36_s20 = int_to_ptr.vmem [resolvable:$true] %s35_s20 }
  0x15   :  { %s69_s21 = scalar_lea.vmem %s36_s20, 32  ;;  %p74_p9 = scmp.lt.s32.totalorder %s36_s20, %s36_s20 }
  0x16   :  { %p70_p8 = scmp.ne.s32.totalorder %s36_s20, %s69_s21  ;;  %p75_p10 = scmp.lt.s32.totalorder %s69_s21, %s69_s21 }
  0x18   :  { %p76_p11 = por %p75_p10, %p74_p9 }
  0x1a   :  { %p77_p12 = pnand %p76_p11, %p70_p8 }
  0x1c   :  { %80 = shalt.err (!%p77_p12)
}
  0x1d   :  { %s81_s24 = scalar_lea.hbm %s132_s1, 32 }
  0x1e   :  { %p82_p13 = scmp.ne.s32.totalorder %s132_s1, %s81_s24  ;;  %p85_p0 = scmp.lt.u32.totalorder %s81_s24, %s132_s1 }
  0x20   :  { %p87_p1 = pnand %p85_p0, %p82_p13 }
  0x22   :  { %90 = shalt.err (!%p87_p1)
}
  0x23   :  { %38 = dma.vmem_to_hbm [thread:$0]  %s36_s20, 32, %s132_s1, [#allocation4]  }
  0x24   :  { %93 = dma.done.wait [#allocation4], 32  }
  0x25   :  { %94 = vsyncadd [#allocation4], 4294967264 }
  0x26   :  { %42 = vsyncpa [#allocation3], 1 }
  0x27   :  { %43 = vsyncpa [#allocation4], 1 }

</bundles_post_ra>
